<compile_context>
chip_gen: v7x
topology: tpu7x:2x2x1
jax: 0.10.0
libtpu: 0.0.40
codegen_flags: <defaults>
</compile_context>

<pallas_src>
import functools
import math

import jax
import jax.numpy as jnp
from jax import lax
from jax.experimental import pallas as pl
from jax.experimental.pallas import tpu as pltpu

_LANE = 128
_INV_SQRT2 = 1.0 / math.sqrt(2.0)
_SQRT_2_OVER_PI = math.sqrt(2.0 / math.pi)


def _round_up(x, m):
    return (x + m - 1) // m * m


def _gelu(x, approximate):
    if approximate:
        # tanh approximation -> transcendental goes to the EUP slot.
        inner = _SQRT_2_OVER_PI * (x + 0.044715 * (x * x * x))
        return 0.5 * x * (1.0 + jnp.tanh(inner))
    # PyTorch nn.GELU default (approximate='none').
    return 0.5 * x * (1.0 + lax.erf(x * _INV_SQRT2))


# --------------------------------------------------------------------------
# Kernels
# --------------------------------------------------------------------------
def _fused_mlp_kernel(x_ref, w1_ref, b1_ref, w2_ref, b2_ref, w3_ref, b3_ref,
                      o_ref, *, approximate_gelu):
    cdt = w1_ref.dtype                     # compute dtype (bf16 by default)
    # Layer 1: Linear (MXU, f32 acc) + bias + GELU in f32.
    h = jnp.dot(x_ref[...].astype(cdt), w1_ref[...],
                preferred_element_type=jnp.float32)
    h = _gelu(h + b1_ref[...], approximate_gelu)
    # Layer 2: Linear + GELU.
    h = jnp.dot(h.astype(cdt), w2_ref[...], preferred_element_type=jnp.float32)
    h = _gelu(h + b2_ref[...], approximate_gelu)
    # Head: Linear ('shape_color').
    y = jnp.dot(h.astype(cdt), w3_ref[...], preferred_element_type=jnp.float32)
    o_ref[...] = (y + b3_ref[...]).astype(o_ref.dtype)


def _linear_kernel(x_ref, w_ref, b_ref, o_ref, acc_ref, *, apply_gelu,
                   approximate_gelu):
    # K-tiled linear (+ optional GELU) used by the large-channel fallback.
    @pl.when(pl.program_id(2) == 0)
    def _():
        acc_ref[...] = jnp.zeros_like(acc_ref)

    acc_ref[...] += jnp.dot(x_ref[...].astype(w_ref.dtype), w_ref[...],
                            preferred_element_type=jnp.float32)

    @pl.when(pl.program_id(2) == pl.num_programs(2) - 1)
    def _():
        y = acc_ref[...] + b_ref[...]
        if apply_gelu:
            y = _gelu(y, approximate_gelu)
        o_ref[...] = y.astype(o_ref.dtype)


# --------------------------------------------------------------------------
# Hardware-aware sizing helpers
# --------------------------------------------------------------------------
def _tpu_budget():
    """(physical VMEM bytes per core, assumed TensorCores per chip)."""
    try:
        vmem = int(pltpu.get_tpu_info().vmem_capacity_bytes)
    except Exception:
        return 64 << 20, 1                 # conservative default
    cores = 2 if vmem <= (64 << 20) else 1  # v7x: 64 MiB / 2 TCs; v5e/v6e: 128 MiB / 1 TC
    return vmem, cores


def _pick_tm(n_rows, requested, cores):
    tm = 512 if requested is None else int(requested)
    if cores >= 2 and n_rows >= 32:
        # Keep >=2 grid steps so both v7x TensorCores get a tile.
        tm = min(tm, max(16, (n_rows // 2 // 16) * 16))
    tm = min(tm, _round_up(max(n_rows, 1), 16))
    if tm >= 256:
        tm = (tm // 256) * 256             # fill full 256-row MXU pushes
    else:
        tm = max(16, (tm // 16) * 16)      # bf16 packs 16 rows per vreg group
    return tm


def _pick_divisor_tile(dim, pref):
    # dim is a multiple of 128; return the largest multiple-of-128 tile <= pref
    # that divides dim.
    t = min(_round_up(pref, _LANE), dim)
    while dim % t != 0:
        t -= _LANE
    return max(t, _LANE)


# --------------------------------------------------------------------------
# Parameter preparation (one-time: pad + cast; keep out of the per-call path)
# --------------------------------------------------------------------------
def prepare_params(params, *, compute_dtype=jnp.bfloat16, approximate_gelu=True):
    """Pad feature/output dims to lane multiples and cast weights once.

    params: w1,w2 of shape (C, C), w3 of shape (C, O) stored (in, out)
            (i.e. transposed relative to torch.nn.Linear.weight);
            b1,b2 of length C, b3 of length O (flat or (1, dim)).
    Set compute_dtype=jnp.float32 to disable bf16 matmul inputs if higher
    precision is needed for very large channel counts.
    """
    w1 = jnp.asarray(params["w1"], jnp.float32)
    w2 = jnp.asarray(params["w2"], jnp.float32)
    w3 = jnp.asarray(params["w3"], jnp.float32)
    C = w1.shape[0]
    O = w3.shape[1]
    C_pad = _round_up(C, _LANE)
    O_pad = _round_up(O, _LANE)

    def padw(a, rows, cols):
        a = jnp.pad(a, ((0, rows - a.shape[0]), (0, cols - a.shape[1])))
        return a.astype(compute_dtype)

    def padb(b, cols):
        b = jnp.asarray(b, jnp.float32).reshape(1, -1)
        return jnp.pad(b, ((0, 0), (0, cols - b.shape[1])))

    return {
        "w1": padw(w1, C_pad, C_pad), "b1": padb(params["b1"], C_pad),
        "w2": padw(w2, C_pad, C_pad), "b2": padb(params["b2"], C_pad),
        "w3": padw(w3, C_pad, O_pad), "b3": padb(params["b3"], O_pad),
        "C": C, "O": O, "C_pad": C_pad, "O_pad": O_pad,
        "approximate_gelu": bool(approximate_gelu),
    }


# --------------------------------------------------------------------------
# Fallback path (resident weights would not fit VMEM): per-layer K-tiled matmul
# --------------------------------------------------------------------------
def _linear_layer(x2d, w, b, *, apply_gelu, approximate_gelu, out_dtype,
                  tm, safe_cap):
    M, K = x2d.shape
    Nout = w.shape[1]
    tk = _pick_divisor_tile(K, 512)
    tn = _pick_divisor_tile(Nout, 512)
    grid = (pl.cdiv(M, tm), Nout // tn, K // tk)

    vmem_limit = (2 * tm * tk * x2d.dtype.itemsize
                  + 2 * tk * tn * w.dtype.itemsize
                  + 2 * tm * tn * jnp.zeros((), out_dtype).dtype.itemsize
                  + tm * tn * 4 + 2 * tn * 4 + (8 << 20))
    vmem_limit = int(min(max(vmem_limit, 32 << 20), safe_cap))

    return pl.pallas_call(
        functools.partial(_linear_kernel, apply_gelu=apply_gelu,
                          approximate_gelu=approximate_gelu),
        out_shape=jax.ShapeDtypeStruct((M, Nout), out_dtype),
        grid_spec=pltpu.PrefetchScalarGridSpec(
            num_scalar_prefetch=0,
            grid=grid,
            in_specs=[
                pl.BlockSpec((tm, tk), lambda i, j, k: (i, k)),
                pl.BlockSpec((tk, tn), lambda i, j, k: (k, j)),
                pl.BlockSpec((1, tn), lambda i, j, k: (0, j)),
            ],
            out_specs=pl.BlockSpec((tm, tn), lambda i, j, k: (i, j)),
            scratch_shapes=[pltpu.VMEM((tm, tn), jnp.float32)],
        ),
        compiler_params=pltpu.CompilerParams(
            dimension_semantics=("parallel", "parallel", "arbitrary"),
            vmem_limit_bytes=vmem_limit,
        ),
    )(x2d, w, b)


def _fallback_forward(x2d, prepared, out_dtype, safe_cap, cores, tm_request):
    approx = prepared["approximate_gelu"]
    cdt = prepared["w1"].dtype
    tm = _pick_tm(x2d.shape[0], tm_request, cores)
    h = _linear_layer(x2d, prepared["w1"], prepared["b1"], apply_gelu=True,
                      approximate_gelu=approx, out_dtype=cdt, tm=tm,
                      safe_cap=safe_cap)
    h = _linear_layer(h, prepared["w2"], prepared["b2"], apply_gelu=True,
                      approximate_gelu=approx, out_dtype=cdt, tm=tm,
                      safe_cap=safe_cap)
    return _linear_layer(h, prepared["w3"], prepared["b3"], apply_gelu=False,
                         approximate_gelu=approx, out_dtype=out_dtype, tm=tm,
                         safe_cap=safe_cap)


# --------------------------------------------------------------------------
# Public forward
# --------------------------------------------------------------------------
def explicit_brick_decoder(x, prepared, *, tm=None, force_fallback=False):
    """x: (..., C). prepared: output of prepare_params. Returns (..., O)."""
    C, O = prepared["C"], prepared["O"]
    C_pad, O_pad = prepared["C_pad"], prepared["O_pad"]
    approx = prepared["approximate_gelu"]

    orig_shape = x.shape
    assert orig_shape[-1] == C, "feature dim mismatch with prepared params"
    x2d = x.reshape(-1, C)
    if C_pad != C:
        # Only pad the feature dim when it is lane-ragged (skipped for C%128==0).
        x2d = jnp.pad(x2d, ((0, 0), (0, C_pad - C)))
    N = x2d.shape[0]
    out_dtype = x.dtype

    vmem_phys, cores = _tpu_budget()
    safe_cap = int(vmem_phys * 0.8)        # headroom for Mosaic internal scratch

    wsize = prepared["w1"].dtype.itemsize
    weight_bytes = (2 * C_pad * C_pad + C_pad * O_pad) * wsize
    bias_bytes = (2 * C_pad + O_pad) * 4
    # Grid-invariant index_map -> weights fetched once, but budget 2x (default
    # double-buffer allocation) so the fused path never over-commits VMEM.
    resident_bytes = 2 * weight_bytes + 2 * bias_bytes

    if force_fallback or resident_bytes > int(0.6 * safe_cap):
        # Weights cannot stay resident: K-tiled per-layer path.
        y_pad = _fallback_forward(x2d, prepared, out_dtype, safe_cap, cores,
                                  256 if tm is None else tm)
    else:
        tm = _pick_tm(N, tm, cores)
        grid = (pl.cdiv(N, tm),)

        x_bytes = x2d.dtype.itemsize
        o_bytes = jnp.zeros((), out_dtype).dtype.itemsize
        io_bytes = 2 * tm * C_pad * x_bytes + 2 * tm * O_pad * o_bytes
        act_bytes = 3 * tm * C_pad * 4      # f32 intermediates headroom
        vmem_limit = resident_bytes + io_bytes + act_bytes + (8 << 20)
        vmem_limit = int(min(max(vmem_limit, 32 << 20), safe_cap))

        flops = 2 * N * (2 * C_pad * C_pad + C_pad * O_pad)
        transcendentals = 2 * N * C_pad
        bytes_accessed = (N * C_pad * x_bytes + weight_bytes + bias_bytes
                          + N * O_pad * o_bytes)

        const = lambda i: (0, 0)
        y_pad = pl.pallas_call(
            functools.partial(_fused_mlp_kernel, approximate_gelu=approx),
            out_shape=jax.ShapeDtypeStruct((N, O_pad), out_dtype),
            grid_spec=pltpu.PrefetchScalarGridSpec(
                num_scalar_prefetch=0,
                grid=grid,
                in_specs=[
                    pl.BlockSpec((tm, C_pad), lambda i: (i, 0)),   # x row tile (streamed)
                    pl.BlockSpec((C_pad, C_pad), const),           # W1 (grid-invariant)
                    pl.BlockSpec((1, C_pad), const),               # b1
                    pl.BlockSpec((C_pad, C_pad), const),           # W2
                    pl.BlockSpec((1, C_pad), const),               # b2
                    pl.BlockSpec((C_pad, O_pad), const),           # W3
                    pl.BlockSpec((1, O_pad), const),               # b3
                ],
                out_specs=pl.BlockSpec((tm, O_pad), lambda i: (i, 0)),
            ),
            compiler_params=pltpu.CompilerParams(
                dimension_semantics=("parallel",),
                vmem_limit_bytes=vmem_limit,
            ),
            cost_estimate=pl.CostEstimate(
                flops=flops, transcendentals=transcendentals,
                bytes_accessed=bytes_accessed),
        )(x2d, prepared["w1"], prepared["b1"], prepared["w2"], prepared["b2"],
          prepared["w3"], prepared["b3"])

    y = y_pad[:, :O]
    return y.reshape(orig_shape[:-1] + (O,))


# --------------------------------------------------------------------------
# Synthetic parameters + pure-JAX references
# --------------------------------------------------------------------------
def init_params(key, channels, num_shapes, num_colors):
    """Deterministic synthetic parameters (shapes match the PyTorch module)."""
    out_dim = num_shapes * num_colors
    k1, k2, k3, k4, k5, k6 = jax.random.split(key, 6)
    scale = 1.0 / math.sqrt(channels)
    # Stored transposed relative to torch.nn.Linear.weight -> (in, out)
    return {
        "w1": jax.random.normal(k1, (channels, channels), jnp.float32) * scale,
        "b1": jax.random.normal(k2, (1, channels), jnp.float32) * 0.01,
        "w2": jax.random.normal(k3, (channels, channels), jnp.float32) * scale,
        "b2": jax.random.normal(k4, (1, channels), jnp.float32) * 0.01,
        "w3": jax.random.normal(k5, (channels, out_dim), jnp.float32) * scale,
        "b3": jax.random.normal(k6, (1, out_dim), jnp.float32) * 0.01,
    }


def reference_forward(x2d, params):
    """Full-f32, exact-erf GELU reference of the PyTorch forward."""
    h = jax.nn.gelu(x2d @ params["w1"] + params["b1"], approximate=False)
    h = jax.nn.gelu(h @ params["w2"] + params["b2"], approximate=False)
    return h @ params["w3"] + params["b3"]


def reference_forward_matched(x2d, params):
    """Pure-JAX reference with the kernel's bf16-matmul / f32-accum / tanh-GELU contract."""
    bf = jnp.bfloat16

    def lin(a, w, b):
        return jnp.dot(a.astype(bf), jnp.asarray(w, jnp.float32).astype(bf),
                       preferred_element_type=jnp.float32) + jnp.asarray(b, jnp.float32)

    h = jax.nn.gelu(lin(x2d, params["w1"], params["b1"]), approximate=True)
    h = jax.nn.gelu(lin(h, params["w2"], params["b2"]), approximate=True)
    return lin(h, params["w3"], params["b3"])


if __name__ == "__main__":
    # Small shapes consistent with the module's forward: x of shape
    # (batch, seq, channels) -> output (batch, seq, num_shapes * num_colors).
    batch, seq, channels = 2, 8, 32
    num_shapes, num_colors = 6, 4          # out_dim = 24

    key = jax.random.PRNGKey(0)
    kx, kp = jax.random.split(key)
    x = jax.random.normal(kx, (batch, seq, channels), jnp.float32)
    params = init_params(kp, channels, num_shapes, num_colors)

    prepared = prepare_params(params)      # one-time pad + bf16 cast of weights
    y = explicit_brick_decoder(x, prepared)
    jax.block_until_ready(y)

    # Smoke-test the K-tiled fallback path (used when weights exceed VMEM).
    y_fb = explicit_brick_decoder(x, prepared, force_fallback=True)
    jax.block_until_ready(y_fb)

    x2d = x.reshape(batch * seq, channels)
    y_match = reference_forward_matched(x2d, params).reshape(batch, seq, -1)
    y_exact = reference_forward(x2d, params).reshape(batch, seq, -1)

    assert y.shape == (batch, seq, num_shapes * num_colors)
    assert jnp.allclose(y, y_match, atol=2e-2, rtol=2e-2), "fused kernel vs matched ref"
    assert jnp.allclose(y, y_exact, atol=1e-1, rtol=1e-1), "fused kernel vs f32/erf ref"
    assert jnp.allclose(y_fb, y, atol=2e-2, rtol=2e-2), "fallback vs fused kernel"

    print("KERNEL_OK")
</pallas_src>

<mosaic_0001>
module attributes {stable_mosaic.version = 11 : i64} {
  func.func @_fused_mlp_kernel(%arg0: i32, %arg1: memref<16x128xf32, #tpu.memory_space<vmem>>, %arg2: memref<128x128xbf16, #tpu.memory_space<vmem>>, %arg3: memref<1x128xf32, #tpu.memory_space<vmem>>, %arg4: memref<128x128xbf16, #tpu.memory_space<vmem>>, %arg5: memref<1x128xf32, #tpu.memory_space<vmem>>, %arg6: memref<128x128xbf16, #tpu.memory_space<vmem>>, %arg7: memref<1x128xf32, #tpu.memory_space<vmem>>, %arg8: memref<16x128xf32, #tpu.memory_space<vmem>>) attributes {dimension_semantics = [#tpu.dimension_semantics<parallel>], iteration_bounds = array<i64: 1>, scalar_prefetch = 0 : i64, scratch_operands = 0 : i64, tpu.core_type = #tpu.core_type<tc>, window_params = [{transform_indices = @transform_0, window_bounds = array<i64: 16, 128>}, {pipeline_mode = #tpu.pipeline_mode<synchronous>, transform_indices = @transform_1, window_bounds = array<i64: 128, 128>}, {pipeline_mode = #tpu.pipeline_mode<synchronous>, transform_indices = @transform_2, window_bounds = array<i64: 1, 128>}, {pipeline_mode = #tpu.pipeline_mode<synchronous>, transform_indices = @transform_3, window_bounds = array<i64: 128, 128>}, {pipeline_mode = #tpu.pipeline_mode<synchronous>, transform_indices = @transform_4, window_bounds = array<i64: 1, 128>}, {pipeline_mode = #tpu.pipeline_mode<synchronous>, transform_indices = @transform_5, window_bounds = array<i64: 128, 128>}, {pipeline_mode = #tpu.pipeline_mode<synchronous>, transform_indices = @transform_6, window_bounds = array<i64: 1, 128>}, {transform_indices = @transform_7, window_bounds = array<i64: 16, 128>}]} {
    %c0 = arith.constant 0 : index
    %c0_0 = arith.constant 0 : index
    %0 = vector.load %arg1[%c0, %c0_0] : memref<16x128xf32, #tpu.memory_space<vmem>>, vector<16x128xf32>
    %1 = arith.truncf %0 : vector<16x128xf32> to vector<16x128xbf16>
    %c0_1 = arith.constant 0 : index
    %c0_2 = arith.constant 0 : index
    %2 = vector.load %arg2[%c0_1, %c0_2] : memref<128x128xbf16, #tpu.memory_space<vmem>>, vector<128x128xbf16>
    %cst = arith.constant dense<0.000000e+00> : vector<16x128xf32>
    %3 = tpu.matmul %1, %2, %cst {dimension_numbers = #tpu.dot_dimension_numbers<[1], [0], [0], [1], [0, 0, 1, 1], [], []>} : vector<16x128xbf16>, vector<128x128xbf16>, vector<16x128xf32> -> vector<16x128xf32>
    %c0_3 = arith.constant 0 : index
    %c0_4 = arith.constant 0 : index
    %4 = vector.load %arg3[%c0_3, %c0_4] : memref<1x128xf32, #tpu.memory_space<vmem>>, vector<1x128xf32>
    %5 = vector.broadcast %4 : vector<1x128xf32> to vector<16x128xf32>
    %6 = arith.addf %3, %5 : vector<16x128xf32>
    %7 = arith.mulf %6, %6 : vector<16x128xf32>
    %8 = arith.mulf %7, %6 : vector<16x128xf32>
    %cst_5 = arith.constant 4.471500e-02 : f32
    %9 = vector.broadcast %cst_5 : f32 to vector<16x128xf32>
    %10 = arith.mulf %9, %8 : vector<16x128xf32>
    %11 = arith.addf %6, %10 : vector<16x128xf32>
    %cst_6 = arith.constant 0.797884583 : f32
    %12 = vector.broadcast %cst_6 : f32 to vector<16x128xf32>
    %13 = arith.mulf %12, %11 : vector<16x128xf32>
    %cst_7 = arith.constant 5.000000e-01 : f32
    %14 = vector.broadcast %cst_7 : f32 to vector<16x128xf32>
    %15 = arith.mulf %14, %6 : vector<16x128xf32>
    %16 = math.tanh %13 : vector<16x128xf32>
    %cst_8 = arith.constant 1.000000e+00 : f32
    %17 = vector.broadcast %cst_8 : f32 to vector<16x128xf32>
    %18 = arith.addf %17, %16 : vector<16x128xf32>
    %19 = arith.mulf %15, %18 : vector<16x128xf32>
    %20 = arith.truncf %19 : vector<16x128xf32> to vector<16x128xbf16>
    %c0_9 = arith.constant 0 : index
    %c0_10 = arith.constant 0 : index
    %21 = vector.load %arg4[%c0_9, %c0_10] : memref<128x128xbf16, #tpu.memory_space<vmem>>, vector<128x128xbf16>
    %cst_11 = arith.constant dense<0.000000e+00> : vector<16x128xf32>
    %22 = tpu.matmul %20, %21, %cst_11 {dimension_numbers = #tpu.dot_dimension_numbers<[1], [0], [0], [1], [0, 0, 1, 1], [], []>} : vector<16x128xbf16>, vector<128x128xbf16>, vector<16x128xf32> -> vector<16x128xf32>
    %c0_12 = arith.constant 0 : index
    %c0_13 = arith.constant 0 : index
    %23 = vector.load %arg5[%c0_12, %c0_13] : memref<1x128xf32, #tpu.memory_space<vmem>>, vector<1x128xf32>
    %24 = vector.broadcast %23 : vector<1x128xf32> to vector<16x128xf32>
    %25 = arith.addf %22, %24 : vector<16x128xf32>
    %26 = arith.mulf %25, %25 : vector<16x128xf32>
    %27 = arith.mulf %26, %25 : vector<16x128xf32>
    %cst_14 = arith.constant 4.471500e-02 : f32
    %28 = vector.broadcast %cst_14 : f32 to vector<16x128xf32>
    %29 = arith.mulf %28, %27 : vector<16x128xf32>
    %30 = arith.addf %25, %29 : vector<16x128xf32>
    %cst_15 = arith.constant 0.797884583 : f32
    %31 = vector.broadcast %cst_15 : f32 to vector<16x128xf32>
    %32 = arith.mulf %31, %30 : vector<16x128xf32>
    %cst_16 = arith.constant 5.000000e-01 : f32
    %33 = vector.broadcast %cst_16 : f32 to vector<16x128xf32>
    %34 = arith.mulf %33, %25 : vector<16x128xf32>
    %35 = math.tanh %32 : vector<16x128xf32>
    %cst_17 = arith.constant 1.000000e+00 : f32
    %36 = vector.broadcast %cst_17 : f32 to vector<16x128xf32>
    %37 = arith.addf %36, %35 : vector<16x128xf32>
    %38 = arith.mulf %34, %37 : vector<16x128xf32>
    %39 = arith.truncf %38 : vector<16x128xf32> to vector<16x128xbf16>
    %c0_18 = arith.constant 0 : index
    %c0_19 = arith.constant 0 : index
    %40 = vector.load %arg6[%c0_18, %c0_19] : memref<128x128xbf16, #tpu.memory_space<vmem>>, vector<128x128xbf16>
    %cst_20 = arith.constant dense<0.000000e+00> : vector<16x128xf32>
    %41 = tpu.matmul %39, %40, %cst_20 {dimension_numbers = #tpu.dot_dimension_numbers<[1], [0], [0], [1], [0, 0, 1, 1], [], []>} : vector<16x128xbf16>, vector<128x128xbf16>, vector<16x128xf32> -> vector<16x128xf32>
    %c0_21 = arith.constant 0 : index
    %c0_22 = arith.constant 0 : index
    %42 = vector.load %arg7[%c0_21, %c0_22] : memref<1x128xf32, #tpu.memory_space<vmem>>, vector<1x128xf32>
    %43 = vector.broadcast %42 : vector<1x128xf32> to vector<16x128xf32>
    %44 = arith.addf %41, %43 : vector<16x128xf32>
    %c0_23 = arith.constant 0 : index
    %c0_24 = arith.constant 0 : index
    %45 = vector.load %arg8[%c0_23, %c0_24] : memref<16x128xf32, #tpu.memory_space<vmem>>, vector<16x128xf32>
    tpu.vector_store %arg8[%c0_23, %c0_24], %44 {strides = array<i32>} : memref<16x128xf32, #tpu.memory_space<vmem>>, vector<16x128xf32>,
    return
  }
  func.func @transform_0(%arg0: i32) -> (i32, i32) {
    %c0_i32 = arith.constant 0 : i32
    %c0_i32_0 = arith.constant 0 : i32
    return %arg0, %c0_i32 : i32, i32
  }
  func.func @transform_1(%arg0: i32) -> (i32, i32) {
    %c0_i32 = arith.constant 0 : i32
    %c0_i32_0 = arith.constant 0 : i32
    %c0_i32_1 = arith.constant 0 : i32
    return %c0_i32, %c0_i32_0 : i32, i32
  }
  func.func @transform_2(%arg0: i32) -> (i32, i32) {
    %c0_i32 = arith.constant 0 : i32
    %c0_i32_0 = arith.constant 0 : i32
    %c0_i32_1 = arith.constant 0 : i32
    return %c0_i32, %c0_i32_0 : i32, i32
  }
  func.func @transform_3(%arg0: i32) -> (i32, i32) {
    %c0_i32 = arith.constant 0 : i32
    %c0_i32_0 = arith.constant 0 : i32
    %c0_i32_1 = arith.constant 0 : i32
    return %c0_i32, %c0_i32_0 : i32, i32
  }
  func.func @transform_4(%arg0: i32) -> (i32, i32) {
    %c0_i32 = arith.constant 0 : i32
    %c0_i32_0 = arith.constant 0 : i32
    %c0_i32_1 = arith.constant 0 : i32
    return %c0_i32, %c0_i32_0 : i32, i32
  }
  func.func @transform_5(%arg0: i32) -> (i32, i32) {
    %c0_i32 = arith.constant 0 : i32
    %c0_i32_0 = arith.constant 0 : i32
    %c0_i32_1 = arith.constant 0 : i32
    return %c0_i32, %c0_i32_0 : i32, i32
  }
  func.func @transform_6(%arg0: i32) -> (i32, i32) {
    %c0_i32 = arith.constant 0 : i32
    %c0_i32_0 = arith.constant 0 : i32
    %c0_i32_1 = arith.constant 0 : i32
    return %c0_i32, %c0_i32_0 : i32, i32
  }
  func.func @transform_7(%arg0: i32) -> (i32, i32) {
    %c0_i32 = arith.constant 0 : i32
    %c0_i32_0 = arith.constant 0 : i32
    return %arg0, %c0_i32 : i32, i32
  }
}

</mosaic_0001>

<bundles_post_ra>
// kernel: tpu_custom_call.1
= control target key start
LH: loop header
LB: loop body
LE: loop exit
PB: predicated region body
PF: predicated region fallthrough
CT: control target
= control target key end

     0   :  { %12 = vsyncpa [#allocation3], 0  ;;  %s928_s0 = inlined_call_operand.hbm [shape: f32[16,128], index: 0, kind: input, shape index: {}]   ;;  %s929_s1 = inlined_call_operand.hbm [shape: bf16[128,128], index: 1, kind: input, shape index: {}]   ;;  %s930_s2 = inlined_call_operand.vmem [shape: f32[1,128], index: 2, kind: input, shape index: {}]   ;;  %s931_s3 = inlined_call_operand.hbm [shape: bf16[128,128], index: 3, kind: input, shape index: {}]   ;;  %s932_s4 = inlined_call_operand.vmem [shape: f32[1,128], index: 4, kind: input, shape index: {}]   ;;  %s933_s5 = inlined_call_operand.hbm [shape: bf16[128,128], index: 5, kind: input, shape index: {}]   ;;  %s934_s6 = inlined_call_operand.vmem [shape: f32[1,128], index: 6, kind: input, shape index: {}]   ;;  %s935_s7 = inlined_call_operand.hbm [shape: f32[16,128], index: 7, kind: output, shape index: {}]  }
   0x1   :  { %13 = vsyncpa [#allocation6], 0 }
   0x2   :  { %14 = vsyncpa [#allocation9], 0 }
   0x3   :  { %15 = vsyncpa [#allocation4], 0  ;;  %s756_s24 = smov [#allocation5]   ;;  %s638_s28 = scalar_lea.hbm %s929_s1, 1024 }
   0x4   :  { %s33_s25 = sshll.u32 %s756_s24, 4  ;;  %p639_p0 = scmp.ne.s32.totalorder %s929_s1, %s638_s28  ;;  %s34_s25 = int_to_ptr.vmem [resolvable:$true] %s33_s25 }
   0x5   :  { %p642_p1 = scmp.lt.u32.totalorder %s638_s28, %s929_s1 }
   0x7   :  { %p644_p2 = pnand %p642_p1, %p639_p0 }
   0x9   :  { %647 = shalt.err (!%p644_p2)
}
   0xa   :  { %s648_s10 = scalar_lea.vmem %s34_s25, 1024  ;;  %p653_p4 = scmp.lt.s32.totalorder %s34_s25, %s34_s25 }
   0xb   :  { %p649_p3 = scmp.ne.s32.totalorder %s34_s25, %s648_s10  ;;  %p654_p5 = scmp.lt.s32.totalorder %s648_s10, %s648_s10 }
   0xd   :  { %p655_p6 = por %p654_p5, %p653_p4 }
   0xf   :  { %p656_p7 = pnand %p655_p6, %p649_p3 }
  0x11   :  { %659 = shalt.err (!%p656_p7)
}
  0x12   :  { %s757_s11 = smov 64   ;;  %s758_s12 = smov 4  }
  0x13   :  { %39 = dma.hbm_to_vmem [thread:$0]  %s929_s1, 1024, %s34_s25, [#allocation6], %s757_s11, %s757_s11, %s758_s12  }
  0x14   :  { %s759_s15 = smov [#allocation2]   ;;  %s660_s19 = scalar_lea.hbm %s928_s0, 256 }
  0x15   :  { %s21_s16 = sshll.u32 %s759_s15, 4  ;;  %p661_p8 = scmp.ne.s32.totalorder %s928_s0, %s660_s19  ;;  %s22_s16 = int_to_ptr.vmem [resolvable:$true] %s21_s16 }
  0x16   :  { %p664_p9 = scmp.lt.u32.totalorder %s660_s19, %s928_s0 }
  0x18   :  { %p666_p10 = pnand %p664_p9, %p661_p8 }
  0x1a   :  { %669 = shalt.err (!%p666_p10)
}
  0x1b   :  { %s670_s24 = scalar_lea.vmem %s22_s16, 256  ;;  %p675_p12 = scmp.lt.s32.totalorder %s22_s16, %s22_s16 }
  0x1c   :  { %p671_p11 = scmp.ne.s32.totalorder %s22_s16, %s670_s24  ;;  %p676_p13 = scmp.lt.s32.totalorder %s670_s24, %s670_s24 }
  0x1e   :  { %p677_p0 = por %p676_p13, %p675_p12 }
  0x20   :  { %p678_p1 = pnand %p677_p0, %p671_p11 }
  0x22   :  { %681 = shalt.err (!%p678_p1)
}
  0x23   :  { %s760_s1 = smov 128   ;;  %s761_s25 = smov 8  }
  0x24   :  { %27 = dma.hbm_to_vmem [thread:$0]  %s928_s0, 256, %s22_s16, [#allocation3], %s760_s1, %s760_s1, %s761_s25  }
  0x25   :  { %s762_s28 = smov [#allocation7]   ;;  %s763_s30 = smov [#allocation8]  }
  0x26   :  { %s47_s29 = sshll.u32 %s762_s28, 4  ;;  %s61_s8 = sshll.u32 %s763_s30, 4  ;;  %s48_s29 = int_to_ptr.vmem [resolvable:$true] %s47_s29  ;;  %s837_s8 = int_to_ptr.vmem [resolvable:$true] %s61_s8 }
  0x27   :  { %s682_s13 = scalar_lea.hbm %s931_s3, 1024 }
  0x28   :  { %p683_p2 = scmp.ne.s32.totalorder %s931_s3, %s682_s13  ;;  %p686_p3 = scmp.lt.u32.totalorder %s682_s13, %s931_s3 }
  0x2a   :  { %p688_p4 = pnand %p686_p3, %p683_p2 }
  0x2c   :  { %691 = shalt.err (!%p688_p4)
}
  0x2d   :  { %s692_s0 = scalar_lea.vmem %s48_s29, 1024  ;;  %p697_p6 = scmp.lt.s32.totalorder %s48_s29, %s48_s29 }
  0x2e   :  { %p693_p5 = scmp.ne.s32.totalorder %s48_s29, %s692_s0  ;;  %p698_p7 = scmp.lt.s32.totalorder %s692_s0, %s692_s0 }
  0x30   :  { %p699_p8 = por %p698_p7, %p697_p6 }
  0x32   :  { %p700_p9 = pnand %p699_p8, %p693_p5 }
  0x34   :  { %703 = shalt.err (!%p700_p9)
}
  0x35   :  { %53 = dma.hbm_to_vmem [thread:$0]  %s931_s3, 1024, %s48_s29, [#allocation6], %s757_s11, %s757_s11, %s758_s12  }
  0x36   :  { %s704_s22 = scalar_lea.hbm %s933_s5, 1024 }
  0x37   :  { %p705_p10 = scmp.ne.s32.totalorder %s933_s5, %s704_s22  ;;  %p708_p11 = scmp.lt.u32.totalorder %s704_s22, %s933_s5 }
  0x39   :  { %p710_p12 = pnand %p708_p11, %p705_p10 }
  0x3b   :  { %713 = shalt.err (!%p710_p12)
}
  0x3c   :  { %s714_s28 = scalar_lea.vmem %s837_s8, 1024  ;;  %p719_p0 = scmp.lt.s32.totalorder %s837_s8, %s837_s8 }
  0x3d   :  { %p715_p13 = scmp.ne.s32.totalorder %s837_s8, %s714_s28  ;;  %p720_p1 = scmp.lt.s32.totalorder %s714_s28, %s714_s28 }
  0x3f   :  { %p721_p2 = por %p720_p1, %p719_p0 }
  0x41   :  { %p722_p3 = pnand %p721_p2, %p715_p13 }
  0x43   :  { %725 = shalt.err (!%p722_p3)
}
  0x44   :  { %67 = dma.hbm_to_vmem [thread:$0]  %s933_s5, 1024, %s837_s8, [#allocation9], %s757_s11, %s757_s11, %s758_s12  }
  0x45   :  { %748 = dma.done.wait [#allocation3], 256  }
  0x46   :  { %749 = vsyncadd [#allocation3], 4294967040 }
  0x47   :  { %750 = dma.done.wait [#allocation6], 2048  }
  0x48   :  { %751 = vsyncadd [#allocation6], 4294965248 }
  0x49   :  { %752 = dma.done.wait [#allocation9], 1024  }
  0x4a   :  { %753 = vsyncadd [#allocation9], 4294966272  ;;  %v764_v0 = vmov 0.0   ;;  %vm765_vm0 = vmmov 0   ;;  %v606_v1 = vld [vmem:[#allocation5] sm:$0xff]   ;;  %v607_v2 = vld [vmem:[#allocation5 + $0x8] sm:$0xff]  }
  0x4b   :  { %535 = vmatprep.subr.bf16.mxu0 %v764_v0  ;;  %551 = vmatprep.mubr.msk.bf16.mxu0 %vm765_vm0, %v764_v0  ;;  %v608_v3 = vld [vmem:[#allocation5 + $0x10] sm:$0xff]   ;;  %v609_v4 = vld [vmem:[#allocation5 + $0x18] sm:$0xff]   ;;  %v610_v5 = vld [vmem:[#allocation5 + $0x20] sm:$0xff]   ;;  %s766_s8 = smov [#allocation10]  }
  0x4c   :  { %555 = vmatprep.subr.bf16.mxu1 %v764_v0  ;;  %571 = vmatprep.mubr.msk.bf16.mxu1 %vm765_vm0, %v764_v0  ;;  %v611_v6 = vld [vmem:[#allocation5 + $0x28] sm:$0xff]   ;;  %v612_v7 = vld [vmem:[#allocation5 + $0x30] sm:$0xff]   ;;  %v613_v8 = vld [vmem:[#allocation5 + $0x38] sm:$0xff]   ;;  %s467_s9 = sshll.u32 %s766_s8, 4  ;;  %s468_s9 = int_to_ptr.vmem [resolvable:$true] %s467_s9 }
  0x4d   :  { %536 = vmatpush3.bf16.msra.mxu0 %v606_v1  ;;  %v83_v9 = vld [vmem:[#allocation2] sm:$0xff]  ;;  %v84_v10 = vld [vmem:[#allocation2 + $0x8] sm:$0xff]  ;;  %v614_v12 = vld [vmem:[#allocation7] sm:$0xff]   ;;  %s726_s10 = scalar_lea.vmem %s468_s9, 256  ;;  %p731_p5 = scmp.lt.s32.totalorder %s468_s9, %s468_s9 }
  0x4e   :  { %537 = vmatprep.subr.bf16.mxu0 %v764_v0  ;;  %v85_v11 = vpack.c.bf16 %v84_v10, %v83_v9  ;;  %556 = vmatpush3.bf16.msra.mxu1 %v614_v12  ;;  %v615_v13 = vld [vmem:[#allocation7 + $0x8] sm:$0xff]   ;;  %v616_v14 = vld [vmem:[#allocation7 + $0x10] sm:$0xff]   ;;  %v617_v15 = vld [vmem:[#allocation7 + $0x18] sm:$0xff]   ;;  %p727_p4 = scmp.ne.s32.totalorder %s468_s9, %s726_s10  ;;  %p732_p6 = scmp.lt.s32.totalorder %s726_s10, %s726_s10 }
  0x4f   :  { %557 = vmatprep.subr.bf16.mxu1 %v764_v0  ;;  %v618_v16 = vld [vmem:[#allocation7 + $0x20] sm:$0xff]   ;;  %v619_v17 = vld [vmem:[#allocation7 + $0x28] sm:$0xff]   ;;  %v620_v18 = vld [vmem:[#allocation7 + $0x30] sm:$0xff]  }
  0x50   :  { %v621_v19 = vld [vmem:[#allocation7 + $0x38] sm:$0xff]   ;;  %v481_v20 = vld [vmem:[%s930_s2] ss:$0 sm:$0xff]  ;;  %v622_v46 = vld [vmem:[#allocation8] sm:$0xff]   ;;  %p733_p7 = por %p732_p6, %p731_p5 }
  0x51   :  { %538 = vmatpush3.bf16.msra.mxu0 %v607_v2  ;;  %v623_v47 = vld [vmem:[#allocation8 + $0x8] sm:$0xff]   ;;  %v624_v48 = vld [vmem:[#allocation8 + $0x10] sm:$0xff]   ;;  %v625_v49 = vld [vmem:[#allocation8 + $0x18] sm:$0xff]  }
  0x52   :  { %539 = vmatprep.subr.bf16.mxu0 %v764_v0  ;;  %558 = vmatpush3.bf16.msra.mxu1 %v615_v13  ;;  %v626_v50 = vld [vmem:[#allocation8 + $0x20] sm:$0xff]   ;;  %v627_v51 = vld [vmem:[#allocation8 + $0x28] sm:$0xff]   ;;  %v628_v52 = vld [vmem:[#allocation8 + $0x30] sm:$0xff]   ;;  %p734_p8 = pnand %p733_p7, %p727_p4 }
  0x53   :  { %559 = vmatprep.subr.bf16.mxu1 %v764_v0  ;;  %v629_v53 = vld [vmem:[#allocation8 + $0x38] sm:$0xff]   ;;  %v490_v54 = vld [vmem:[%s932_s4] ss:$0 sm:$0xff] }
  0x55   :  { %540 = vmatpush3.bf16.msra.mxu0 %v608_v3 }
  0x56   :  { %541 = vmatprep.subr.bf16.mxu0 %v764_v0  ;;  %560 = vmatpush3.bf16.msra.mxu1 %v616_v14 }
  0x57   :  { %561 = vmatprep.subr.bf16.mxu1 %v764_v0 }
  0x59   :  { %542 = vmatpush3.bf16.msra.mxu0 %v609_v4 }
  0x5a   :  { %543 = vmatprep.subr.bf16.mxu0 %v764_v0  ;;  %562 = vmatpush3.bf16.msra.mxu1 %v617_v15 }
  0x5b   :  { %563 = vmatprep.subr.bf16.mxu1 %v764_v0 }
  0x5d   :  { %544 = vmatpush3.bf16.msra.mxu0 %v610_v5 }
  0x5e   :  { %545 = vmatprep.subr.bf16.mxu0 %v764_v0  ;;  %564 = vmatpush3.bf16.msra.mxu1 %v618_v16  ;;  %v499_v16 = vld [vmem:[%s934_s6] ss:$0 sm:$0xff] }
  0x5f   :  { %565 = vmatprep.subr.bf16.mxu1 %v764_v0 }
  0x61   :  { %546 = vmatpush3.bf16.msra.mxu0 %v611_v6 }
  0x62   :  { %547 = vmatprep.subr.bf16.mxu0 %v764_v0  ;;  %566 = vmatpush3.bf16.msra.mxu1 %v619_v17 }
  0x63   :  { %567 = vmatprep.subr.bf16.mxu1 %v764_v0 }
  0x65   :  { %548 = vmatpush3.bf16.msra.mxu0 %v612_v7 }
  0x66   :  { %549 = vmatprep.subr.bf16.mxu0 %v764_v0  ;;  %568 = vmatpush3.bf16.msra.mxu1 %v620_v18 }
  0x67   :  { %569 = vmatprep.subr.bf16.mxu1 %v764_v0 }
  0x69   :  { %550 = vmatpush3.bf16.msra.mxu0 %v613_v8 }
  0x6a   :  { %575 = vmatprep.subr.bf16.mxu0 %v764_v0  ;;  %570 = vmatpush3.bf16.msra.mxu1 %v621_v19 }
  0x6c   :  { %552 = vmatmul.mubr.bf16.vlgmr.msra.gmra.mrb[0].mxu0 %v85_v11 }
  0x6d   :  { %591 = vmatprep.mubr.msk.bf16.mxu0 %vm765_vm0, %v764_v0  ;;  %576 = vmatpush3.bf16.msra.mxu0 %v622_v46 }
  0x6e   :  { %577 = vmatprep.subr.bf16.mxu0 %v764_v0 }
  0x71   :  { %578 = vmatpush3.bf16.msra.mxu0 %v623_v47 }
  0x72   :  { %579 = vmatprep.subr.bf16.mxu0 %v764_v0 }
  0x75   :  { %580 = vmatpush3.bf16.msra.mxu0 %v624_v48 }
  0x76   :  { %581 = vmatprep.subr.bf16.mxu0 %v764_v0 }
  0x79   :  { %582 = vmatpush3.bf16.msra.mxu0 %v625_v49 }
  0x7a   :  { %583 = vmatprep.subr.bf16.mxu0 %v764_v0 }
  0x7d   :  { %584 = vmatpush3.bf16.msra.mxu0 %v626_v50 }
  0x7e   :  { %585 = vmatprep.subr.bf16.mxu0 %v764_v0 }
  0x81   :  { %586 = vmatpush3.bf16.msra.mxu0 %v627_v51 }
  0x82   :  { %587 = vmatprep.subr.bf16.mxu0 %v764_v0 }
  0x85   :  { %588 = vmatpush3.bf16.msra.mxu0 %v628_v52 }
  0x86   :  { %589 = vmatprep.subr.bf16.mxu0 %v764_v0 }
  0x89   :  { %590 = vmatpush3.bf16.msra.mxu0 %v629_v53 }
 0x13f   :  { %v191_v21 = vpop.f32.mrb[0].mxu0 }
 0x140   :  { %v192_v22 = vadd.f32 %v481_v20, %v191_v21  ;;  %v553_v23 = vpop.f32.mrb[1].mxu0 }
 0x141   :  { %v194_v24 = vpop.f32.mrb[2].mxu0 }
 0x142   :  { %v198_v25 = vmul.f32 %v192_v22, %v192_v22  ;;  %v195_v26 = vadd.f32 %v481_v20, %v194_v24  ;;  %v554_v27 = vpop.f32.mrb[3].mxu0  ;;  %v208_v40 = vmul.f32 0.5, %v192_v22 }
 0x144   :  { %v200_v28 = vmul.f32 %v198_v25, %v192_v22  ;;  %v199_v29 = vmul.f32 %v195_v26, %v195_v26  ;;  %v209_v41 = vmul.f32 0.5, %v195_v26 }
 0x146   :  { %v202_v30 = vmul.f32 0.044715, %v200_v28  ;;  %v201_v31 = vmul.f32 %v199_v29, %v195_v26 }
 0x148   :  { %v204_v32 = vadd.f32 %v202_v30, %v192_v22  ;;  %v203_v33 = vmul.f32 0.044715, %v201_v31 }
 0x14a   :  { %v206_v34 = vmul.f32 0.7978846, %v204_v32  ;;  %v205_v35 = vadd.f32 %v203_v33, %v195_v26 }
 0x14c   :  { %630 = vtanh.f32 %v206_v34  ;;  %v207_v36 = vmul.f32 0.7978846, %v205_v35 }
 0x14e   :  { %632 = vtanh.f32 %v207_v36 }
 0x156   :  { %v631_v37 = vpop.eup %630 }
 0x157   :  { %v212_v38 = vadd.f32 1.0, %v631_v37 }
 0x158   :  { %v633_v39 = vpop.eup %632 }
 0x159   :  { %v213_v42 = vadd.f32 1.0, %v633_v39  ;;  %v214_v43 = vmul.f32 %v212_v38, %v208_v40 }
 0x15b   :  { %v215_v44 = vmul.f32 %v213_v42, %v209_v41 }
 0x15d   :  { %v216_v45 = vpack.c.bf16 %v215_v44, %v214_v43 }
 0x15f   :  { %572 = vmatmul.mubr.bf16.vlgmr.msra.gmra.mrb[0].mxu1 %v216_v45 }
 0x232   :  { %v322_v55 = vpop.f32.mrb[0].mxu1 }
 0x233   :  { %v323_v56 = vadd.f32 %v490_v54, %v322_v55  ;;  %v573_v57 = vpop.f32.mrb[1].mxu1 }
 0x234   :  { %v325_v58 = vpop.f32.mrb[2].mxu1 }
 0x235   :  { %v329_v59 = vmul.f32 %v323_v56, %v323_v56  ;;  %v326_v60 = vadd.f32 %v490_v54, %v325_v58  ;;  %v574_v61 = vpop.f32.mrb[3].mxu1  ;;  %v339_v10 = vmul.f32 0.5, %v323_v56 }
 0x237   :  { %v331_v62 = vmul.f32 %v329_v59, %v323_v56  ;;  %v330_v63 = vmul.f32 %v326_v60, %v326_v60  ;;  %v340_v11 = vmul.f32 0.5, %v326_v60 }
 0x239   :  { %v333_v1 = vmul.f32 0.044715, %v331_v62  ;;  %v332_v2 = vmul.f32 %v330_v63, %v326_v60 }
 0x23b   :  { %v335_v3 = vadd.f32 %v333_v1, %v323_v56  ;;  %v334_v4 = vmul.f32 0.044715, %v332_v2 }
 0x23d   :  { %v337_v5 = vmul.f32 0.7978846, %v335_v3  ;;  %v336_v0 = vadd.f32 %v334_v4, %v326_v60 }
 0x23f   :  { %634 = vtanh.f32 %v337_v5  ;;  %v338_v6 = vmul.f32 0.7978846, %v336_v0 }
 0x241   :  { %636 = vtanh.f32 %v338_v6 }
 0x249   :  { %v635_v7 = vpop.eup %634 }
 0x24a   :  { %v343_v8 = vadd.f32 1.0, %v635_v7 }
 0x24b   :  { %v637_v9 = vpop.eup %636 }
 0x24c   :  { %v344_v12 = vadd.f32 1.0, %v637_v9  ;;  %v345_v13 = vmul.f32 %v343_v8, %v339_v10 }
 0x24e   :  { %v346_v14 = vmul.f32 %v344_v12, %v340_v11 }
 0x250   :  { %v347_v15 = vpack.c.bf16 %v346_v14, %v345_v13 }
 0x252   :  { %592 = vmatmul.mubr.bf16.vlgmr.msra.gmra.mrb[4].mxu0 %v347_v15 }
 0x325   :  { %v453_v17 = vpop.f32.mrb[4].mxu0 }
 0x326   :  { %v454_v18 = vadd.f32 %v499_v16, %v453_v17  ;;  %v593_v19 = vpop.f32.mrb[5].mxu0 }
 0x327   :  { %v456_v20 = vpop.f32.mrb[6].mxu0 }
 0x328   :  { %460 = vst [vmem:[#allocation10] sm:$0xff] %v454_v18  ;;  %v457_v21 = vadd.f32 %v499_v16, %v456_v20  ;;  %v594_v22 = vpop.f32.mrb[7].mxu0 }
 0x32a   :  { %461 = vst [vmem:[#allocation10 + $0x8] sm:$0xff] %v457_v21 }
 0x32b   :  { %737 = shalt.err (!%p734_p8)
}
 0x32c   :  { %s738_s14 = scalar_lea.hbm %s935_s7, 256 }
 0x32d   :  { %p739_p9 = scmp.ne.s32.totalorder %s935_s7, %s738_s14  ;;  %p742_p10 = scmp.lt.u32.totalorder %s738_s14, %s935_s7 }
 0x32f   :  { %p744_p11 = pnand %p742_p10, %p739_p9 }
 0x331   :  { %747 = shalt.err (!%p744_p11)
}
 0x332   :  { %473 = dma.vmem_to_hbm [thread:$0]  %s468_s9, 256, %s935_s7, [#allocation4], %s760_s1, %s760_s1, %s761_s25  }
 0x333   :  { %754 = dma.done.wait [#allocation4], 256  }
 0x334   :  { %755 = vsyncadd [#allocation4], 4294967040 }
 0x335   :  { %477 = vsyncpa [#allocation3], 1 }
 0x336   :  { %478 = vsyncpa [#allocation6], 1 }
 0x337   :  { %479 = vsyncpa [#allocation9], 1 }
 0x338   :  { %480 = vsyncpa [#allocation4], 1 }

</bundles_post_ra>
